<compile_context>
chip_gen: v7x
topology: tpu7x:2x2x1
jax: 0.10.0
libtpu: 0.0.40
codegen_flags: <defaults>
</compile_context>

<pallas_src>
import functools

import jax
import jax.numpy as jnp
from jax.experimental import pallas as pl
from jax.experimental.pallas import tpu as pltpu

LANE = 128      # lane width: T is padded to a multiple of this
SUBLANE = 8     # sublane width: batch-tile granularity


def _round_up(x, m):
    return (x + m - 1) // m * m


def _vmem_limit_bytes():
    """Generation-aware scoped-VMEM limit (~48 MiB on v7x, ~96 MiB on v5e/v6e)."""
    cap = 64 * 1024 * 1024                       # conservative fallback (v7x-sized)
    try:
        queried = int(pltpu.get_tpu_info().vmem_capacity_bytes)
        if queried >= 32 * 1024 * 1024:
            cap = queried
    except Exception:
        pass
    return int(min(cap * 3 // 4, 100 * 1024 * 1024))


def _pick_batch_tile(b, t, d, t_tile=LANE):
    """Largest sublane tile keeping kernel-2's per-block VMEM footprint in budget."""
    t_pad = _round_up(t, LANE)
    budget = 2 * _vmem_limit_bytes() // 3
    per_row = (2 * t_tile * d * 2            # streamed enc tile (bf16, double-buffered)
               + 2 * t_tile * d * 4          # f32 feat / tanh temporaries
               + 4 * t_pad * 4)              # resident f32 logits / coverage / mask rows
    tile = (budget // max(per_row, 1)) // SUBLANE * SUBLANE
    tile = min(tile, 256, _round_up(b, SUBLANE))
    return max(tile, SUBLANE)


# -----------------------------------------------------------------------------
# Step-invariant setup (run once per model / once per source sequence)
# -----------------------------------------------------------------------------
def prepare_params(params, *, enc_dtype=jnp.bfloat16):
    """Pre-transpose / reshape weights once (hoisted out of the decode loop)."""
    wh, ws, wc_w, wc_b, v = params
    d = wh.shape[0]
    use_bf16 = jnp.dtype(enc_dtype) == jnp.dtype(jnp.bfloat16)
    mm_dtype = jnp.bfloat16 if use_bf16 else jnp.float32
    return {
        "d": d,
        "enc_dtype": jnp.dtype(enc_dtype),
        "wh_t": jnp.asarray(wh, mm_dtype).T,                 # (D, D), pre-transposed
        "ws_t": jnp.asarray(ws, jnp.float32).T,              # (D, D), pre-transposed
        "wc_w": jnp.asarray(wc_w, jnp.float32).reshape(1, d),
        "wc_b": jnp.asarray(wc_b, jnp.float32).reshape(1, d),
        "v": jnp.asarray(v, jnp.float32).reshape(1, d),
    }


# -----------------------------------------------------------------------------
# Kernel 1: encoder projection over a flattened (B_pad*T_pad, D) operand
# -----------------------------------------------------------------------------
def _enc_proj_kernel(h_ref, wh_t_ref, out_ref):
    out_ref[...] = jnp.dot(h_ref[...], wh_t_ref[...],
                           preferred_element_type=jnp.float32).astype(out_ref.dtype)


def encoder_features(h, mask, prepared, *, batch_tile, t_tile=None, row_tile=512):
    """Pad h/mask once per source sequence and compute enc_feat = h @ Wh^T."""
    b, t, d = h.shape
    t_pad = _round_up(t, LANE)
    if t_tile is None:
        t_tile = 256 if (t_pad % 256 == 0 and t_pad >= 1024) else LANE
    num_t = t_pad // t_tile
    b_pad = _round_up(b, batch_tile)

    enc_dtype = prepared["enc_dtype"]
    mm_dtype = prepared["wh_t"].dtype

    h_p = jnp.zeros((b_pad, t_pad, d), mm_dtype).at[:b, :t, :].set(h.astype(mm_dtype))
    h_flat = h_p.reshape(b_pad * t_pad, d)
    m = h_flat.shape[0]                       # multiple of 1024 (b_pad*t_pad)
    rt = min(row_tile, m)
    while m % rt:
        rt //= 2

    enc_flat = pl.pallas_call(
        _enc_proj_kernel,
        out_shape=jax.ShapeDtypeStruct((m, d), enc_dtype),
        grid=(m // rt,),
        in_specs=[pl.BlockSpec((rt, d), lambda i: (i, 0)),
                  pl.BlockSpec((d, d), lambda i: (0, 0))],
        out_specs=pl.BlockSpec((rt, d), lambda i: (i, 0)),
        compiler_params=pltpu.CompilerParams(
            dimension_semantics=("parallel",),
            vmem_limit_bytes=_vmem_limit_bytes()),
    )(h_flat, prepared["wh_t"])
    enc_pad = enc_flat.reshape(b_pad, t_pad, d)

    mask_p = jnp.zeros((b_pad, t_pad), jnp.float32).at[:b, :t].set(
        mask.astype(jnp.float32))

    return {
        "enc": enc_pad, "mask": mask_p,
        "b": b, "t": t, "d": d,
        "b_pad": b_pad, "t_pad": t_pad,
        "t_tile": t_tile, "num_t": num_t,
        "batch_tile": batch_tile,
    }


# -----------------------------------------------------------------------------
# Carry layout helpers: (num_t, B_pad, t_tile) keeps T-tiles on a leading axis
# -----------------------------------------------------------------------------
def init_coverage(src):
    """Zero coverage in the padded carry layout (for decode loops)."""
    return jnp.zeros((src["num_t"], src["b_pad"], src["t_tile"]), jnp.float32)


def _to_carry(x, src):
    b, t = src["b"], src["t"]
    x_p = jnp.zeros((src["b_pad"], src["t_pad"]), jnp.float32).at[:b, :t].set(
        x.astype(jnp.float32))
    return jnp.transpose(
        x_p.reshape(src["b_pad"], src["num_t"], src["t_tile"]), (1, 0, 2))


def _from_carry(x3, src):
    b, t = src["b"], src["t"]
    return jnp.transpose(x3, (1, 0, 2)).reshape(src["b_pad"], src["t_pad"])[:b, :t]


# -----------------------------------------------------------------------------
# Kernel 2: per-decoder-step attention (T-tiled streaming + softmax epilogue)
# -----------------------------------------------------------------------------
def _attn_step_kernel(use_coverage, compute_dtype, *refs):
    if use_coverage:
        (enc_ref, dec_ref, mask_ref, cov_ref,
         wc_w_ref, wc_b_ref, v_ref, a_ref, ncov_ref) = refs
    else:
        enc_ref, dec_ref, mask_ref, v_ref, a_ref = refs

    j = pl.program_id(1)

    enc = enc_ref[...].astype(jnp.float32)           # (bt, t_tile, D)  bf16->f32
    dec = dec_ref[...]                               # (bt, D) hoisted s @ Ws^T
    mask = mask_ref[...]                             # (bt, t_tile)

    feat = enc + dec[:, None, :]
    if use_coverage:
        cov_t = cov_ref[j]                           # (bt, t_tile)  leading-dim index
        feat = (feat
                + cov_t[:, :, None] * wc_w_ref[...][None, :, :]
                + wc_b_ref[...][None, :, :])

    # e_t = v . tanh(feat): tanh on the EUP, D-reduction on the XLU, f32 accum.
    th = jnp.tanh(feat.astype(compute_dtype))
    e_t = jnp.sum(th.astype(jnp.float32) * v_ref[...][None, :, :], axis=-1)

    # masked_fill(mask == 0, -inf) with a finite sentinel (exp underflows to 0;
    # a fully masked row yields a uniform distribution instead of NaN).
    e_t = jnp.where(mask == 0.0, -1e30, e_t)

    # Stash this T-tile's masked logits in the resident output buffer.
    a_ref[j] = e_t

    # Softmax + coverage update once all T tiles have been processed.
    @pl.when(j == pl.num_programs(1) - 1)
    def _():
        logits = a_ref[...]                          # (num_t, bt, t_tile)
        m = jnp.max(logits, axis=2, keepdims=True)
        m = jnp.max(m, axis=0, keepdims=True)
        p = jnp.exp(logits - m)
        denom = jnp.sum(p, axis=2, keepdims=True)
        denom = jnp.sum(denom, axis=0, keepdims=True)
        inv = pl.reciprocal(denom, approx=True)      # EUP vrcp seed
        inv = inv * (2.0 - denom * inv)              # 1 Newton step -> ~f32 exact
        a_t = p * inv
        a_ref[...] = a_t
        if use_coverage:
            ncov_ref[...] = cov_ref[...] + a_t


def attention_step(src, s, coverage_carry, prepared, *, use_coverage=True,
                   compute_dtype=jnp.float32):
    """One decoder step.  coverage_carry / next coverage use the carry layout."""
    b, d = src["b"], src["d"]
    b_pad = src["b_pad"]
    t_tile, num_t = src["t_tile"], src["num_t"]
    batch_tile = src["batch_tile"]

    # Hoisted decoder projection: one tiny MXU matmul per step over full B
    # instead of an (8, D)x(D, D) matmul inside every grid step.
    dec = jnp.dot(s.astype(jnp.float32), prepared["ws_t"])
    dec_p = jnp.zeros((b_pad, d), jnp.float32).at[:b, :].set(dec)

    grid = (b_pad // batch_tile, num_t)
    enc_spec = pl.BlockSpec((batch_tile, t_tile, d), lambda i, j: (i, j, 0))
    dec_spec = pl.BlockSpec((batch_tile, d), lambda i, j: (i, 0))
    mask_spec = pl.BlockSpec((batch_tile, t_tile), lambda i, j: (i, j))
    carry_spec = pl.BlockSpec((num_t, batch_tile, t_tile), lambda i, j: (0, i, 0))
    vec_spec = pl.BlockSpec((1, d), lambda i, j: (0, 0))

    inputs = [src["enc"], dec_p, src["mask"]]
    in_specs = [enc_spec, dec_spec, mask_spec]
    out_shapes = [jax.ShapeDtypeStruct((num_t, b_pad, t_tile), jnp.float32)]
    out_specs = [carry_spec]
    io_aliases = {}
    if use_coverage:
        inputs += [coverage_carry, prepared["wc_w"], prepared["wc_b"]]
        in_specs += [carry_spec, vec_spec, vec_spec]
        out_shapes.append(jax.ShapeDtypeStruct((num_t, b_pad, t_tile), jnp.float32))
        out_specs.append(carry_spec)
        io_aliases = {3: 1}        # carry coverage in place: cov_in -> next_cov_out
    inputs.append(prepared["v"])
    in_specs.append(vec_spec)

    kernel = functools.partial(_attn_step_kernel, use_coverage, compute_dtype)
    outs = pl.pallas_call(
        kernel,
        out_shape=tuple(out_shapes),
        grid=grid,
        in_specs=in_specs,
        out_specs=tuple(out_specs),
        input_output_aliases=io_aliases,
        compiler_params=pltpu.CompilerParams(
            dimension_semantics=("parallel", "arbitrary"),
            vmem_limit_bytes=_vmem_limit_bytes()),
    )(*inputs)

    if use_coverage:
        return outs[0], outs[1]
    return outs[0], None


# -----------------------------------------------------------------------------
# Convenience wrapper mirroring Attention.forward (one-shot; a real decode loop
# would call prepare_params / encoder_features once and attention_step per step,
# carrying coverage in the padded carry layout).
# -----------------------------------------------------------------------------
def attention_forward(h, mask, s, coverage, params, *, use_coverage=True,
                      enc_dtype=jnp.bfloat16, compute_dtype=jnp.float32,
                      batch_tile=None):
    b, t, d = h.shape
    prepared = prepare_params(params, enc_dtype=enc_dtype)
    if batch_tile is None:
        batch_tile = _pick_batch_tile(b, t, d)
    src = encoder_features(h, mask, prepared, batch_tile=batch_tile)
    cov_carry = _to_carry(coverage, src) if use_coverage else None
    a3, ncov3 = attention_step(src, s, cov_carry, prepared,
                               use_coverage=use_coverage,
                               compute_dtype=compute_dtype)
    a_t = _from_carry(a3, src)
    if use_coverage:
        return a_t, _from_carry(ncov3, src)
    return a_t


# -----------------------------------------------------------------------------
# Pure-JAX reference mirroring the PyTorch forward.
# -----------------------------------------------------------------------------
def attention_reference(h, mask, s, coverage, params, *, use_coverage=True):
    wh, ws, wc_w, wc_b, v = params
    feat = h @ wh.T + (s @ ws.T)[:, None, :]
    if use_coverage:
        feat = feat + coverage[:, :, None] @ wc_w.T + wc_b
    e_t = jnp.squeeze(jnp.tanh(feat) @ v.T, axis=2)
    e_t = jnp.where(mask == 0, -jnp.inf, e_t)
    a_t = jax.nn.softmax(e_t, axis=-1)
    if use_coverage:
        return a_t, coverage + a_t
    return a_t


if __name__ == "__main__":
    hidden_dim = 16
    D = 2 * hidden_dim            # 32

    key = jax.random.PRNGKey(0)
    k = jax.random.split(key, 10)

    # Parameters (same shapes as the PyTorch module).
    wh = jax.random.normal(k[0], (D, D), jnp.float32) * 0.1    # w_h.weight
    ws = jax.random.normal(k[1], (D, D), jnp.float32) * 0.1    # w_s.weight
    wc_w = jax.random.normal(k[2], (D, 1), jnp.float32) * 0.1  # w_c.weight
    wc_b = jax.random.normal(k[3], (D,), jnp.float32) * 0.1    # w_c.bias
    v = jax.random.normal(k[4], (1, D), jnp.float32) * 0.1     # v.weight
    params = (wh, ws, wc_w, wc_b, v)

    # --- Case A: tiny shapes, coverage on, bf16 enc_feat storage (default) ----
    B, T = 2, 8
    h = jax.random.normal(k[5], (B, T, D), jnp.float32)
    s = jax.random.normal(k[6], (B, D), jnp.float32)
    coverage = jax.random.uniform(k[7], (B, T), jnp.float32)
    mask = jnp.ones((B, T), jnp.float32).at[1, 5:].set(0.0)    # 3 padded slots

    a_t, next_cov = attention_forward(h, mask, s, coverage, params,
                                      use_coverage=True)
    jax.block_until_ready((a_t, next_cov))
    a_ref, ncov_ref = attention_reference(h, mask, s, coverage, params,
                                          use_coverage=True)
    assert jnp.allclose(a_t, a_ref, atol=2e-2), "A: attention mismatch"
    assert jnp.allclose(next_cov, ncov_ref, atol=2e-2), "A: coverage mismatch"
    assert jnp.allclose(jnp.sum(a_t, axis=-1), 1.0, atol=1e-3)

    # --- Case B: f32 enc_feat (v5e-style full precision), coverage off --------
    a_nc = attention_forward(h, mask, s, coverage, params, use_coverage=False,
                             enc_dtype=jnp.float32)
    jax.block_until_ready(a_nc)
    a_nc_ref = attention_reference(h, mask, s, coverage, params,
                                   use_coverage=False)
    assert jnp.allclose(a_nc, a_nc_ref, atol=1e-4), "B: no-coverage mismatch"

    # --- Case C: longer source -> multiple T tiles + padded batch, f32 check --
    B2, T2 = 3, 300
    h2 = jax.random.normal(k[8], (B2, T2, D), jnp.float32)
    s2 = jax.random.normal(k[9], (B2, D), jnp.float32)
    cov2 = jax.random.uniform(k[7], (B2, T2), jnp.float32)
    mask2 = jnp.ones((B2, T2), jnp.float32).at[0, 250:].set(0.0).at[2, 100:].set(0.0)

    a2, ncov2 = attention_forward(h2, mask2, s2, cov2, params, use_coverage=True,
                                  enc_dtype=jnp.float32)
    jax.block_until_ready((a2, ncov2))
    a2_ref, ncov2_ref = attention_reference(h2, mask2, s2, cov2, params,
                                            use_coverage=True)
    assert jnp.allclose(a2, a2_ref, atol=1e-4), "C: attention mismatch"
    assert jnp.allclose(ncov2, ncov2_ref, atol=1e-4), "C: coverage mismatch"
    assert jnp.allclose(jnp.sum(a2, axis=-1), 1.0, atol=1e-4)

    print("KERNEL_OK")
</pallas_src>

<mosaic_0001>
module attributes {stable_mosaic.version = 11 : i64} {
  func.func @_enc_proj_kernel(%arg0: i32, %arg1: memref<512x32xbf16, #tpu.memory_space<vmem>>, %arg2: memref<32x32xbf16, #tpu.memory_space<vmem>>, %arg3: memref<512x32xbf16, #tpu.memory_space<vmem>>) attributes {dimension_semantics = [#tpu.dimension_semantics<parallel>], iteration_bounds = array<i64: 2>, scalar_prefetch = 0 : i64, scratch_operands = 0 : i64, tpu.core_type = #tpu.core_type<tc>, window_params = [{transform_indices = @transform_0, window_bounds = array<i64: 512, 32>}, {pipeline_mode = #tpu.pipeline_mode<synchronous>, transform_indices = @transform_1, window_bounds = array<i64: 32, 32>}, {transform_indices = @transform_2, window_bounds = array<i64: 512, 32>}]} {
    %c0 = arith.constant 0 : index
    %c0_0 = arith.constant 0 : index
    %0 = vector.load %arg1[%c0, %c0_0] : memref<512x32xbf16, #tpu.memory_space<vmem>>, vector<512x32xbf16>
    %c0_1 = arith.constant 0 : index
    %c0_2 = arith.constant 0 : index
    %1 = vector.load %arg2[%c0_1, %c0_2] : memref<32x32xbf16, #tpu.memory_space<vmem>>, vector<32x32xbf16>
    %cst = arith.constant dense<0.000000e+00> : vector<512x32xf32>
    %2 = tpu.matmul %0, %1, %cst {dimension_numbers = #tpu.dot_dimension_numbers<[1], [0], [0], [1], [0, 0, 1, 1], [], []>} : vector<512x32xbf16>, vector<32x32xbf16>, vector<512x32xf32> -> vector<512x32xf32>
    %3 = arith.truncf %2 : vector<512x32xf32> to vector<512x32xbf16>
    %c0_3 = arith.constant 0 : index
    %c0_4 = arith.constant 0 : index
    %4 = vector.load %arg3[%c0_3, %c0_4] : memref<512x32xbf16, #tpu.memory_space<vmem>>, vector<512x32xbf16>
    tpu.vector_store %arg3[%c0_3, %c0_4], %3 {strides = array<i32>} : memref<512x32xbf16, #tpu.memory_space<vmem>>, vector<512x32xbf16>,
    return
  }
  func.func @transform_0(%arg0: i32) -> (i32, i32) {
    %c0_i32 = arith.constant 0 : i32
    %c0_i32_0 = arith.constant 0 : i32
    return %arg0, %c0_i32 : i32, i32
  }
  func.func @transform_1(%arg0: i32) -> (i32, i32) {
    %c0_i32 = arith.constant 0 : i32
    %c0_i32_0 = arith.constant 0 : i32
    %c0_i32_1 = arith.constant 0 : i32
    return %c0_i32, %c0_i32_0 : i32, i32
  }
  func.func @transform_2(%arg0: i32) -> (i32, i32) {
    %c0_i32 = arith.constant 0 : i32
    %c0_i32_0 = arith.constant 0 : i32
    return %arg0, %c0_i32 : i32, i32
  }
}

</mosaic_0001>

<bundles_post_ra>
// kernel: tpu_custom_call.1
= control target key start
LH: loop header
LB: loop body
LE: loop exit
PB: predicated region body
PF: predicated region fallthrough
CT: control target
= control target key end

     0   :  { %s1527_s9 = smov 0   ;;  %s1753_s0 = inlined_call_operand.vmem [shape: bf16[1024,32], index: 0, kind: input, shape index: {}]   ;;  %s1754_s1 = inlined_call_operand.vmem [shape: bf16[32,32], index: 1, kind: input, shape index: {}]   ;;  %s1755_s2 = inlined_call_operand.vmem [shape: bf16[1024,32], index: 2, kind: output, shape index: {}]  }
   0x1 LB: > { %s1151_s10 = sadd.s32 4294967295, %s1510_s9   ;;  %p1155_p0 = scmp.ge.s32.totalorder %s1510_s9, 1  ;;  %s1510_s9 = sphi %s1527_s9, %s12_s9  }
   0x2   : > { %p113_p1 = scmp.lt.s32.totalorder %s1510_s9, 3 }
   0x4   : > { %p114_p2 = pnand %p1155_p0, %p113_p1 }
   0x5   : > { %v1470_v0 = vld [vmem:[%s1754_s1] sm:$0xff] (!%p114_p2)   ;;  %s1156_s13 = sshll.u32 (!%p114_p2), %s1151_s10, 6  ;;  %v1471_v1 = vld [vmem:[%s1754_s1 + $0x8] sm:$0xff] (!%p114_p2)   ;;  %vm388_vm0 = vcmask (!%p114_p2), 261120   ;;  %vm1030_vm1 = vcmask (!%p114_p2), 257024  }
   0x6   : > { %117 = sbr.rel (%p114_p2) target bundleno = 293 (0x125), region = 28  ;;  %p136_p3 = scmp.lt.s32.totalorder (!%p114_p2), %s1156_s13, 127  ;;  %1390 = vmatprep.subr.bf16.mxu0 (!%p114_p2), %v1470_v0  ;;  %1458 = vmatprep.subr.bf16.mxu1 (!%p114_p2), %v1470_v0 }
   0x7   : > { %1391 = vmatpush3.bf16.msra.mxu0 (!%p114_p2), %v1470_v0  ;;  %1460 = vmatpush3.bf16.msra.mxu1 (!%p114_p2), %v1470_v0 }
   0x8   : > { %1392 = vmatprep.subr.bf16.mxu0 (!%p114_p2), %v1471_v1  ;;  %1459 = vmatprep.subr.bf16.mxu1 (!%p114_p2), %v1471_v1 }
   0xb   : > { %1393 = vmatpush3.bf16.msra.mxu0 (!%p114_p2), %v1471_v1  ;;  %1461 = vmatpush3.bf16.msra.mxu1 (!%p114_p2), %v1471_v1 }
   0xd   : > { %s1757_s13 = smov (!%p136_p3, %s1156_s13), 127 }
   0xe   : > { %s1157_s16 = sshll.u32 %s1757_s13, 2 }
   0xf   : > { %s1549_s19 = scalar_lea.vmem %s1753_s0, %s1157_s16  ;;  %s1620_s22 = scalar_lea.vmem %s1755_s2, %s1157_s16 }
  0x10   : > { %v1472_v2 = vld [vmem:[%s1549_s19] sm:$0xff]   ;;  %v1474_v4 = vld [vmem:[%s1549_s19 + $0x8] sm:$0xff]   ;;  %v1476_v6 = vld [vmem:[%s1549_s19 + $0x10] sm:$0xff]  }
  0x11   : > { %v1473_v3 = vld [vmem:[%s1549_s19 + $0x80] sm:$0xff]   ;;  %1394 = vmatprep.mubr.msk.bf16.mxu0 %vm388_vm0, %v1472_v2  ;;  %v1475_v5 = vld [vmem:[%s1549_s19 + $0x88] sm:$0xff]   ;;  %v1477_v7 = vld [vmem:[%s1549_s19 + $0x90] sm:$0xff]  }
  0x12   : > { %1426 = vmatprep.mubr.msk.bf16.mxu1 %vm388_vm0, %v1473_v3  ;;  %1395 = vmatmul.mubr.msk.bf16.vlgmr.msra.gmra.mrb[0].mxu0 %vm388_vm0, %v1474_v4  ;;  %v1478_v8 = vld [vmem:[%s1549_s19 + $0x18] sm:$0xff]   ;;  %v1480_v10 = vld [vmem:[%s1549_s19 + $0x20] sm:$0xff]   ;;  %v1482_v12 = vld [vmem:[%s1549_s19 + $0x28] sm:$0xff]  }
  0x13   : > { %1427 = vmatmul.mubr.msk.bf16.vlgmr.msra.gmra.mrb[0].mxu1 %vm388_vm0, %v1475_v5  ;;  %1398 = vmatprep.mubr.msk.bf16.mxu0 %vm388_vm0, %v1476_v6  ;;  %v1479_v9 = vld [vmem:[%s1549_s19 + $0x98] sm:$0xff]   ;;  %v1481_v11 = vld [vmem:[%s1549_s19 + $0xa0] sm:$0xff]   ;;  %v1483_v13 = vld [vmem:[%s1549_s19 + $0xa8] sm:$0xff]  }
  0x14   : > { %1430 = vmatprep.mubr.msk.bf16.mxu1 %vm388_vm0, %v1477_v7  ;;  %v1484_v14 = vld [vmem:[%s1549_s19 + $0x30] sm:$0xff]   ;;  %v1486_v16 = vld [vmem:[%s1549_s19 + $0x38] sm:$0xff]   ;;  %v1488_v18 = vld [vmem:[%s1549_s19 + $0x40] sm:$0xff]  }
  0x15   : > { %v1485_v15 = vld [vmem:[%s1549_s19 + $0xb0] sm:$0xff]   ;;  %v1487_v17 = vld [vmem:[%s1549_s19 + $0xb8] sm:$0xff]   ;;  %v1489_v19 = vld [vmem:[%s1549_s19 + $0xc0] sm:$0xff]  }
  0x16   : > { %v1490_v20 = vld [vmem:[%s1549_s19 + $0x48] sm:$0xff]   ;;  %v1492_v22 = vld [vmem:[%s1549_s19 + $0x50] sm:$0xff]   ;;  %v1494_v24 = vld [vmem:[%s1549_s19 + $0x58] sm:$0xff]  }
  0x17   : > { %v1491_v21 = vld [vmem:[%s1549_s19 + $0xc8] sm:$0xff]   ;;  %v1493_v23 = vld [vmem:[%s1549_s19 + $0xd0] sm:$0xff]   ;;  %v1495_v25 = vld [vmem:[%s1549_s19 + $0xd8] sm:$0xff]  }
  0x18   : > { %v1496_v26 = vld [vmem:[%s1549_s19 + $0x60] sm:$0xff]   ;;  %v1498_v28 = vld [vmem:[%s1549_s19 + $0x68] sm:$0xff]   ;;  %v1500_v30 = vld [vmem:[%s1549_s19 + $0x70] sm:$0xff]  }
  0x19   : > { %v1497_v27 = vld [vmem:[%s1549_s19 + $0xe0] sm:$0xff]   ;;  %v1499_v29 = vld [vmem:[%s1549_s19 + $0xe8] sm:$0xff]   ;;  %v1501_v31 = vld [vmem:[%s1549_s19 + $0xf0] sm:$0xff]  }
  0x1a   : > { %1399 = vmatmul.mubr.msk.bf16.gmra.mrb[4].mxu0 %vm388_vm0, %v1478_v8  ;;  %v1502_v32 = vld [vmem:[%s1549_s19 + $0x78] sm:$0xff]  }
  0x1b   : > { %1431 = vmatmul.mubr.msk.bf16.gmra.mrb[4].mxu1 %vm388_vm0, %v1479_v9  ;;  %1402 = vmatprep.mubr.msk.bf16.mxu0 %vm388_vm0, %v1480_v10  ;;  %v1503_v33 = vld [vmem:[%s1549_s19 + $0xf8] sm:$0xff]  }
  0x1c   : > { %1434 = vmatprep.mubr.msk.bf16.mxu1 %vm388_vm0, %v1481_v11 }
  0x22   : > { %1403 = vmatmul.mubr.msk.bf16.gmra.mrb[8].mxu0 %vm388_vm0, %v1482_v12 }
  0x23   : > { %1435 = vmatmul.mubr.msk.bf16.gmra.mrb[8].mxu1 %vm388_vm0, %v1483_v13  ;;  %1406 = vmatprep.mubr.msk.bf16.mxu0 %vm388_vm0, %v1484_v14 }
  0x24   : > { %1438 = vmatprep.mubr.msk.bf16.mxu1 %vm388_vm0, %v1485_v15 }
  0x2a   : > { %1407 = vmatmul.mubr.msk.bf16.gmra.mrb[12].mxu0 %vm388_vm0, %v1486_v16 }
  0x2b   : > { %1439 = vmatmul.mubr.msk.bf16.gmra.mrb[12].mxu1 %vm388_vm0, %v1487_v17  ;;  %1410 = vmatprep.mubr.msk.bf16.mxu0 %vm388_vm0, %v1488_v18 }
  0x2c   : > { %1442 = vmatprep.mubr.msk.bf16.mxu1 %vm388_vm0, %v1489_v19 }
  0x32   : > { %1411 = vmatmul.mubr.msk.bf16.gmra.mrb[16].mxu0 %vm388_vm0, %v1490_v20 }
  0x33   : > { %1443 = vmatmul.mubr.msk.bf16.gmra.mrb[16].mxu1 %vm388_vm0, %v1491_v21  ;;  %1414 = vmatprep.mubr.msk.bf16.mxu0 %vm388_vm0, %v1492_v22 }
  0x34   : > { %1446 = vmatprep.mubr.msk.bf16.mxu1 %vm388_vm0, %v1493_v23 }
  0x3a   : > { %1415 = vmatmul.mubr.msk.bf16.gmra.mrb[20].mxu0 %vm388_vm0, %v1494_v24 }
  0x3b   : > { %1447 = vmatmul.mubr.msk.bf16.gmra.mrb[20].mxu1 %vm388_vm0, %v1495_v25  ;;  %1418 = vmatprep.mubr.msk.bf16.mxu0 %vm388_vm0, %v1496_v26 }
  0x3c   : > { %1450 = vmatprep.mubr.msk.bf16.mxu1 %vm388_vm0, %v1497_v27 }
  0x42   : > { %1419 = vmatmul.mubr.msk.bf16.gmra.mrb[24].mxu0 %vm388_vm0, %v1498_v28 }
  0x43   : > { %1451 = vmatmul.mubr.msk.bf16.gmra.mrb[24].mxu1 %vm388_vm0, %v1499_v29  ;;  %1422 = vmatprep.mubr.msk.bf16.mxu0 %vm388_vm0, %v1500_v30 }
  0x44   : > { %1454 = vmatprep.mubr.msk.bf16.mxu1 %vm388_vm0, %v1501_v31 }
  0x4a   : > { %1423 = vmatmul.mubr.msk.bf16.gmra.mrb[28].mxu0 %vm388_vm0, %v1502_v32 }
  0x4b   : > { %1455 = vmatmul.mubr.msk.bf16.gmra.mrb[28].mxu1 %vm388_vm0, %v1503_v33 }
  0xe5   : > { %v1396_v34 = vpop.f32.mrb[0].mxu0 }
  0xe6   : > { %v1294_v35 = vpack.c.bf16 %v1396_v34, %v1396_v34  ;;  %v1428_v36 = vpop.f32.mrb[0].mxu1  ;;  %v519_v37 = vpop.f32.mrb[1].mxu0 }
  0xe7   : > { %v1326_v38 = vpack.c.bf16 %v1428_v36, %v1428_v36  ;;  %v1292_v39 = vpack.c.bf16 %v519_v37, %v519_v37  ;;  %v647_v40 = vpop.f32.mrb[1].mxu1  ;;  %v1397_v41 = vpop.f32.mrb[2].mxu0 }
  0xe8   : > { %1033 = vst.msk [vmem:[%s1620_s22 + $0x8] sm:$0xf] %vm1030_vm1, %v1294_v35  ;;  %v1324_v42 = vpack.c.bf16 %v647_v40, %v647_v40  ;;  %v1295_v43 = vpack.c.bf16 %v1397_v41, %v1397_v41  ;;  %v1429_v44 = vpop.f32.mrb[2].mxu1  ;;  %v522_v45 = vpop.f32.mrb[3].mxu0 }
  0xe9   : > { %1065 = vst.msk [vmem:[%s1620_s22 + $0x88] sm:$0xf] %vm1030_vm1, %v1326_v38  ;;  %1031 = vst.msk [vmem:[%s1620_s22] sm:$0xf] %vm1030_vm1, %v1292_v39  ;;  %v1327_v46 = vpack.c.bf16 %v1429_v44, %v1429_v44  ;;  %v1293_v47 = vpack.c.bf16 %v522_v45, %v522_v45  ;;  %v650_v48 = vpop.f32.mrb[3].mxu1 }
  0xea   : > { %1063 = vst.msk [vmem:[%s1620_s22 + $0x80] sm:$0xf] %vm1030_vm1, %v1324_v42  ;;  %1034 = vst.msk [vmem:[%s1620_s22 + $0xc] sm:$0xf] %vm1030_vm1, %v1295_v43  ;;  %v1325_v49 = vpack.c.bf16 %v650_v48, %v650_v48 }
  0xeb   : > { %1066 = vst.msk [vmem:[%s1620_s22 + $0x8c] sm:$0xf] %vm1030_vm1, %v1327_v46  ;;  %1032 = vst.msk [vmem:[%s1620_s22 + $0x4] sm:$0xf] %vm1030_vm1, %v1293_v47 }
  0xec   : > { %1064 = vst.msk [vmem:[%s1620_s22 + $0x84] sm:$0xf] %vm1030_vm1, %v1325_v49 }
  0xed   : > { %v1400_v50 = vpop.f32.mrb[4].mxu0 }
  0xee   : > { %v1298_v51 = vpack.c.bf16 %v1400_v50, %v1400_v50  ;;  %v1432_v52 = vpop.f32.mrb[4].mxu1  ;;  %v535_v53 = vpop.f32.mrb[5].mxu0 }
  0xef   : > { %v1330_v54 = vpack.c.bf16 %v1432_v52, %v1432_v52  ;;  %v1296_v55 = vpack.c.bf16 %v535_v53, %v535_v53  ;;  %v663_v56 = vpop.f32.mrb[5].mxu1  ;;  %v1401_v57 = vpop.f32.mrb[6].mxu0 }
  0xf0   : > { %1037 = vst.msk [vmem:[%s1620_s22 + $0x18] sm:$0xf] %vm1030_vm1, %v1298_v51  ;;  %v1328_v58 = vpack.c.bf16 %v663_v56, %v663_v56  ;;  %v1299_v59 = vpack.c.bf16 %v1401_v57, %v1401_v57  ;;  %v1433_v60 = vpop.f32.mrb[6].mxu1  ;;  %v538_v61 = vpop.f32.mrb[7].mxu0 }
  0xf1   : > { %1069 = vst.msk [vmem:[%s1620_s22 + $0x98] sm:$0xf] %vm1030_vm1, %v1330_v54  ;;  %1035 = vst.msk [vmem:[%s1620_s22 + $0x10] sm:$0xf] %vm1030_vm1, %v1296_v55  ;;  %v1331_v62 = vpack.c.bf16 %v1433_v60, %v1433_v60  ;;  %v1297_v63 = vpack.c.bf16 %v538_v61, %v538_v61  ;;  %v666_v0 = vpop.f32.mrb[7].mxu1 }
  0xf2   : > { %1067 = vst.msk [vmem:[%s1620_s22 + $0x90] sm:$0xf] %vm1030_vm1, %v1328_v58  ;;  %1038 = vst.msk [vmem:[%s1620_s22 + $0x1c] sm:$0xf] %vm1030_vm1, %v1299_v59  ;;  %v1329_v1 = vpack.c.bf16 %v666_v0, %v666_v0 }
  0xf3   : > { %1070 = vst.msk [vmem:[%s1620_s22 + $0x9c] sm:$0xf] %vm1030_vm1, %v1331_v62  ;;  %1036 = vst.msk [vmem:[%s1620_s22 + $0x14] sm:$0xf] %vm1030_vm1, %v1297_v63 }
  0xf4   : > { %1068 = vst.msk [vmem:[%s1620_s22 + $0x94] sm:$0xf] %vm1030_vm1, %v1329_v1 }
  0xf5   : > { %v1404_v2 = vpop.f32.mrb[8].mxu0 }
  0xf6   : > { %v1302_v3 = vpack.c.bf16 %v1404_v2, %v1404_v2  ;;  %v1436_v4 = vpop.f32.mrb[8].mxu1  ;;  %v551_v5 = vpop.f32.mrb[9].mxu0 }
  0xf7   : > { %v1334_v6 = vpack.c.bf16 %v1436_v4, %v1436_v4  ;;  %v1300_v7 = vpack.c.bf16 %v551_v5, %v551_v5  ;;  %v679_v8 = vpop.f32.mrb[9].mxu1  ;;  %v1405_v9 = vpop.f32.mrb[10].mxu0 }
  0xf8   : > { %1041 = vst.msk [vmem:[%s1620_s22 + $0x28] sm:$0xf] %vm1030_vm1, %v1302_v3  ;;  %v1332_v10 = vpack.c.bf16 %v679_v8, %v679_v8  ;;  %v1303_v11 = vpack.c.bf16 %v1405_v9, %v1405_v9  ;;  %v1437_v12 = vpop.f32.mrb[10].mxu1  ;;  %v554_v13 = vpop.f32.mrb[11].mxu0 }
  0xf9   : > { %1073 = vst.msk [vmem:[%s1620_s22 + $0xa8] sm:$0xf] %vm1030_vm1, %v1334_v6  ;;  %1039 = vst.msk [vmem:[%s1620_s22 + $0x20] sm:$0xf] %vm1030_vm1, %v1300_v7  ;;  %v1335_v14 = vpack.c.bf16 %v1437_v12, %v1437_v12  ;;  %v1301_v15 = vpack.c.bf16 %v554_v13, %v554_v13  ;;  %v682_v16 = vpop.f32.mrb[11].mxu1 }
  0xfa   : > { %1071 = vst.msk [vmem:[%s1620_s22 + $0xa0] sm:$0xf] %vm1030_vm1, %v1332_v10  ;;  %1042 = vst.msk [vmem:[%s1620_s22 + $0x2c] sm:$0xf] %vm1030_vm1, %v1303_v11  ;;  %v1333_v17 = vpack.c.bf16 %v682_v16, %v682_v16 }
  0xfb   : > { %1074 = vst.msk [vmem:[%s1620_s22 + $0xac] sm:$0xf] %vm1030_vm1, %v1335_v14  ;;  %1040 = vst.msk [vmem:[%s1620_s22 + $0x24] sm:$0xf] %vm1030_vm1, %v1301_v15 }
  0xfc   : > { %1072 = vst.msk [vmem:[%s1620_s22 + $0xa4] sm:$0xf] %vm1030_vm1, %v1333_v17 }
  0xfd   : > { %v1408_v18 = vpop.f32.mrb[12].mxu0 }
  0xfe   : > { %v1306_v19 = vpack.c.bf16 %v1408_v18, %v1408_v18  ;;  %v1440_v20 = vpop.f32.mrb[12].mxu1  ;;  %v567_v21 = vpop.f32.mrb[13].mxu0 }
  0xff   : > { %v1338_v22 = vpack.c.bf16 %v1440_v20, %v1440_v20  ;;  %v1304_v23 = vpack.c.bf16 %v567_v21, %v567_v21  ;;  %v695_v24 = vpop.f32.mrb[13].mxu1  ;;  %v1409_v25 = vpop.f32.mrb[14].mxu0 }
 0x100   : > { %1045 = vst.msk [vmem:[%s1620_s22 + $0x38] sm:$0xf] %vm1030_vm1, %v1306_v19  ;;  %v1336_v26 = vpack.c.bf16 %v695_v24, %v695_v24  ;;  %v1307_v27 = vpack.c.bf16 %v1409_v25, %v1409_v25  ;;  %v1441_v28 = vpop.f32.mrb[14].mxu1  ;;  %v570_v29 = vpop.f32.mrb[15].mxu0 }
 0x101   : > { %1077 = vst.msk [vmem:[%s1620_s22 + $0xb8] sm:$0xf] %vm1030_vm1, %v1338_v22  ;;  %1043 = vst.msk [vmem:[%s1620_s22 + $0x30] sm:$0xf] %vm1030_vm1, %v1304_v23  ;;  %v1339_v30 = vpack.c.bf16 %v1441_v28, %v1441_v28  ;;  %v1305_v31 = vpack.c.bf16 %v570_v29, %v570_v29  ;;  %v698_v32 = vpop.f32.mrb[15].mxu1 }
 0x102   : > { %1075 = vst.msk [vmem:[%s1620_s22 + $0xb0] sm:$0xf] %vm1030_vm1, %v1336_v26  ;;  %1046 = vst.msk [vmem:[%s1620_s22 + $0x3c] sm:$0xf] %vm1030_vm1, %v1307_v27  ;;  %v1337_v33 = vpack.c.bf16 %v698_v32, %v698_v32 }
 0x103   : > { %1078 = vst.msk [vmem:[%s1620_s22 + $0xbc] sm:$0xf] %vm1030_vm1, %v1339_v30  ;;  %1044 = vst.msk [vmem:[%s1620_s22 + $0x34] sm:$0xf] %vm1030_vm1, %v1305_v31 }
 0x104   : > { %1076 = vst.msk [vmem:[%s1620_s22 + $0xb4] sm:$0xf] %vm1030_vm1, %v1337_v33 }
 0x105   : > { %v1412_v34 = vpop.f32.mrb[16].mxu0 }
 0x106   : > { %v1310_v35 = vpack.c.bf16 %v1412_v34, %v1412_v34  ;;  %v1444_v36 = vpop.f32.mrb[16].mxu1  ;;  %v583_v37 = vpop.f32.mrb[17].mxu0 }
 0x107   : > { %v1342_v38 = vpack.c.bf16 %v1444_v36, %v1444_v36  ;;  %v1308_v39 = vpack.c.bf16 %v583_v37, %v583_v37  ;;  %v711_v40 = vpop.f32.mrb[17].mxu1  ;;  %v1413_v41 = vpop.f32.mrb[18].mxu0 }
 0x108   : > { %1049 = vst.msk [vmem:[%s1620_s22 + $0x48] sm:$0xf] %vm1030_vm1, %v1310_v35  ;;  %v1340_v42 = vpack.c.bf16 %v711_v40, %v711_v40  ;;  %v1311_v43 = vpack.c.bf16 %v1413_v41, %v1413_v41  ;;  %v1445_v44 = vpop.f32.mrb[18].mxu1  ;;  %v586_v45 = vpop.f32.mrb[19].mxu0 }
 0x109   : > { %1081 = vst.msk [vmem:[%s1620_s22 + $0xc8] sm:$0xf] %vm1030_vm1, %v1342_v38  ;;  %1047 = vst.msk [vmem:[%s1620_s22 + $0x40] sm:$0xf] %vm1030_vm1, %v1308_v39  ;;  %v1343_v46 = vpack.c.bf16 %v1445_v44, %v1445_v44  ;;  %v1309_v47 = vpack.c.bf16 %v586_v45, %v586_v45  ;;  %v714_v48 = vpop.f32.mrb[19].mxu1 }
 0x10a   : > { %1079 = vst.msk [vmem:[%s1620_s22 + $0xc0] sm:$0xf] %vm1030_vm1, %v1340_v42  ;;  %1050 = vst.msk [vmem:[%s1620_s22 + $0x4c] sm:$0xf] %vm1030_vm1, %v1311_v43  ;;  %v1341_v49 = vpack.c.bf16 %v714_v48, %v714_v48 }
 0x10b   : > { %1082 = vst.msk [vmem:[%s1620_s22 + $0xcc] sm:$0xf] %vm1030_vm1, %v1343_v46  ;;  %1048 = vst.msk [vmem:[%s1620_s22 + $0x44] sm:$0xf] %vm1030_vm1, %v1309_v47 }
 0x10c   : > { %1080 = vst.msk [vmem:[%s1620_s22 + $0xc4] sm:$0xf] %vm1030_vm1, %v1341_v49 }
 0x10d   : > { %v1416_v50 = vpop.f32.mrb[20].mxu0 }
 0x10e   : > { %v1314_v51 = vpack.c.bf16 %v1416_v50, %v1416_v50  ;;  %v1448_v52 = vpop.f32.mrb[20].mxu1  ;;  %v599_v53 = vpop.f32.mrb[21].mxu0 }
 0x10f   : > { %v1346_v54 = vpack.c.bf16 %v1448_v52, %v1448_v52  ;;  %v1312_v55 = vpack.c.bf16 %v599_v53, %v599_v53  ;;  %v727_v56 = vpop.f32.mrb[21].mxu1  ;;  %v1417_v57 = vpop.f32.mrb[22].mxu0 }
 0x110   : > { %1053 = vst.msk [vmem:[%s1620_s22 + $0x58] sm:$0xf] %vm1030_vm1, %v1314_v51  ;;  %v1344_v58 = vpack.c.bf16 %v727_v56, %v727_v56  ;;  %v1315_v59 = vpack.c.bf16 %v1417_v57, %v1417_v57  ;;  %v1449_v60 = vpop.f32.mrb[22].mxu1  ;;  %v602_v61 = vpop.f32.mrb[23].mxu0 }
 0x111   : > { %1085 = vst.msk [vmem:[%s1620_s22 + $0xd8] sm:$0xf] %vm1030_vm1, %v1346_v54  ;;  %1051 = vst.msk [vmem:[%s1620_s22 + $0x50] sm:$0xf] %vm1030_vm1, %v1312_v55  ;;  %v1347_v62 = vpack.c.bf16 %v1449_v60, %v1449_v60  ;;  %v1313_v63 = vpack.c.bf16 %v602_v61, %v602_v61  ;;  %v730_v0 = vpop.f32.mrb[23].mxu1 }
 0x112   : > { %1083 = vst.msk [vmem:[%s1620_s22 + $0xd0] sm:$0xf] %vm1030_vm1, %v1344_v58  ;;  %1054 = vst.msk [vmem:[%s1620_s22 + $0x5c] sm:$0xf] %vm1030_vm1, %v1315_v59  ;;  %v1345_v1 = vpack.c.bf16 %v730_v0, %v730_v0 }
 0x113   : > { %1086 = vst.msk [vmem:[%s1620_s22 + $0xdc] sm:$0xf] %vm1030_vm1, %v1347_v62  ;;  %1052 = vst.msk [vmem:[%s1620_s22 + $0x54] sm:$0xf] %vm1030_vm1, %v1313_v63 }
 0x114   : > { %1084 = vst.msk [vmem:[%s1620_s22 + $0xd4] sm:$0xf] %vm1030_vm1, %v1345_v1 }
 0x115   : > { %v1420_v2 = vpop.f32.mrb[24].mxu0 }
 0x116   : > { %v1318_v3 = vpack.c.bf16 %v1420_v2, %v1420_v2  ;;  %v1452_v4 = vpop.f32.mrb[24].mxu1  ;;  %v615_v5 = vpop.f32.mrb[25].mxu0 }
 0x117   : > { %v1350_v6 = vpack.c.bf16 %v1452_v4, %v1452_v4  ;;  %v1316_v7 = vpack.c.bf16 %v615_v5, %v615_v5  ;;  %v743_v8 = vpop.f32.mrb[25].mxu1  ;;  %v1421_v9 = vpop.f32.mrb[26].mxu0 }
 0x118   : > { %1057 = vst.msk [vmem:[%s1620_s22 + $0x68] sm:$0xf] %vm1030_vm1, %v1318_v3  ;;  %v1348_v10 = vpack.c.bf16 %v743_v8, %v743_v8  ;;  %v1319_v11 = vpack.c.bf16 %v1421_v9, %v1421_v9  ;;  %v1453_v12 = vpop.f32.mrb[26].mxu1  ;;  %v618_v13 = vpop.f32.mrb[27].mxu0 }
 0x119   : > { %1089 = vst.msk [vmem:[%s1620_s22 + $0xe8] sm:$0xf] %vm1030_vm1, %v1350_v6  ;;  %1055 = vst.msk [vmem:[%s1620_s22 + $0x60] sm:$0xf] %vm1030_vm1, %v1316_v7  ;;  %v1351_v14 = vpack.c.bf16 %v1453_v12, %v1453_v12  ;;  %v1317_v15 = vpack.c.bf16 %v618_v13, %v618_v13  ;;  %v746_v16 = vpop.f32.mrb[27].mxu1 }
 0x11a   : > { %1087 = vst.msk [vmem:[%s1620_s22 + $0xe0] sm:$0xf] %vm1030_vm1, %v1348_v10  ;;  %1058 = vst.msk [vmem:[%s1620_s22 + $0x6c] sm:$0xf] %vm1030_vm1, %v1319_v11  ;;  %v1349_v17 = vpack.c.bf16 %v746_v16, %v746_v16 }
 0x11b   : > { %1090 = vst.msk [vmem:[%s1620_s22 + $0xec] sm:$0xf] %vm1030_vm1, %v1351_v14  ;;  %1056 = vst.msk [vmem:[%s1620_s22 + $0x64] sm:$0xf] %vm1030_vm1, %v1317_v15 }
 0x11c   : > { %1088 = vst.msk [vmem:[%s1620_s22 + $0xe4] sm:$0xf] %vm1030_vm1, %v1349_v17 }
 0x11d   : > { %v1424_v18 = vpop.f32.mrb[28].mxu0 }
 0x11e   : > { %v1322_v19 = vpack.c.bf16 %v1424_v18, %v1424_v18  ;;  %v1456_v20 = vpop.f32.mrb[28].mxu1  ;;  %v631_v21 = vpop.f32.mrb[29].mxu0 }
 0x11f   : > { %v1354_v22 = vpack.c.bf16 %v1456_v20, %v1456_v20  ;;  %v1320_v23 = vpack.c.bf16 %v631_v21, %v631_v21  ;;  %v759_v24 = vpop.f32.mrb[29].mxu1  ;;  %v1425_v25 = vpop.f32.mrb[30].mxu0 }
 0x120   : > { %1061 = vst.msk [vmem:[%s1620_s22 + $0x78] sm:$0xf] %vm1030_vm1, %v1322_v19  ;;  %v1352_v26 = vpack.c.bf16 %v759_v24, %v759_v24  ;;  %v1323_v27 = vpack.c.bf16 %v1425_v25, %v1425_v25  ;;  %v1457_v28 = vpop.f32.mrb[30].mxu1  ;;  %v634_v29 = vpop.f32.mrb[31].mxu0 }
 0x121   : > { %1093 = vst.msk [vmem:[%s1620_s22 + $0xf8] sm:$0xf] %vm1030_vm1, %v1354_v22  ;;  %1059 = vst.msk [vmem:[%s1620_s22 + $0x70] sm:$0xf] %vm1030_vm1, %v1320_v23  ;;  %v1355_v30 = vpack.c.bf16 %v1457_v28, %v1457_v28  ;;  %v1321_v31 = vpack.c.bf16 %v634_v29, %v634_v29  ;;  %v762_v32 = vpop.f32.mrb[31].mxu1 }
 0x122   : > { %1091 = vst.msk [vmem:[%s1620_s22 + $0xf0] sm:$0xf] %vm1030_vm1, %v1352_v26  ;;  %1062 = vst.msk [vmem:[%s1620_s22 + $0x7c] sm:$0xf] %vm1030_vm1, %v1323_v27  ;;  %v1353_v33 = vpack.c.bf16 %v762_v32, %v762_v32 }
 0x123   : > { %1094 = vst.msk [vmem:[%s1620_s22 + $0xfc] sm:$0xf] %vm1030_vm1, %v1355_v30  ;;  %1060 = vst.msk [vmem:[%s1620_s22 + $0x74] sm:$0xf] %vm1030_vm1, %v1321_v31 }
 0x124   : > { %1092 = vst.msk [vmem:[%s1620_s22 + $0xf4] sm:$0xf] %vm1030_vm1, %v1353_v33 }
 0x125 PF: > { %s12_s9 = sadd.s32 1, %s1510_s9  }
 0x126   : > { %p9_p4 = scmp.ge.s32.totalorder %s12_s9, 4  }
 0x128   :  { %11 = sbr.rel (!%p9_p4) target bundleno = 1 (0x1), region = 58 }

</bundles_post_ra>
